<compile_context>
chip_gen: v7x
topology: tpu7x:2x2x1
jax: 0.10.0
libtpu: 0.0.40
codegen_flags: <defaults>
</compile_context>

<pallas_src>
import math
import jax
import jax.numpy as jnp
from jax.experimental import pallas as pl
from jax.experimental.pallas import tpu as pltpu


def gcn_kernel(x_ref, a_ref, w_ref, o_ref):
    """One grid step processes a block of `Bblk` examples.

    x_ref : (Bblk, N, Fin)  bf16   node features
    a_ref : (Bblk, N, N)    bf16   adjacency A + I_n (0/1 entries), NOT transposed
    w_ref : (Fin, FP)       bf16   weight zero-padded to lane-dense FP (mult of 128)
    o_ref : (Bblk, N, FP)   bf16   relu(D A^T D (X W)); padded columns are zero
    """
    Bblk, N, Fin = x_ref.shape
    FP = w_ref.shape[1]

    X = x_ref[...]                                  # (Bblk, N, Fin) bf16
    A = a_ref[...]                                  # (Bblk, N, N)   bf16
    W = w_ref[...]                                  # (Fin, FP)      bf16

    # Degree / normalization computed in-kernel: A entries are 0/1 so the bf16 -> f32
    # rowsum is exact; adj = A + I_n guarantees deg >= 1 (no rsqrt(0) inf/NaN path).
    # TODO(synk): weighted adjacencies would be quantized by the bf16 cast here.
    deg = jnp.sum(A.astype(jnp.float32), axis=-1, keepdims=True)     # (Bblk, N, 1)
    d = jax.lax.rsqrt(deg)                                           # (Bblk, N, 1)

    # support = X @ W as one 2-D matmul (M = Bblk*N). Reshape is layout-free for
    # N % 8 == 0 (sublane tile), which the wrapper guarantees at these shapes.
    support = jnp.dot(
        X.reshape(Bblk * N, Fin), W,
        preferred_element_type=jnp.float32).reshape(Bblk, N, FP)     # f32

    # out = D A^T D S == d * (A^T @ (d * S)); contract A's ROW dim directly so no
    # transposed copy of A is ever materialized (neither in HBM nor in-kernel).
    y = (d * support).astype(jnp.bfloat16)                           # (Bblk, N, FP)
    aty = jnp.einsum('bji,bjf->bif', A, y,
                     preferred_element_type=jnp.float32)             # (Bblk, N, FP)

    # ReLU; bias is None in the module's default config. Store bf16 (halved writeback).
    o_ref[...] = jnp.maximum(d * aty, 0.0).astype(o_ref.dtype)


def _vmem_limit_bytes():
    """Scoped VMEM limit: generous on v5e/v6e (128 MiB physical), safe on v7x (64 MiB)."""
    try:
        cap = int(pltpu.get_tpu_info().vmem_capacity_bytes)
        return min((cap * 3) // 4, 100 * 1024 * 1024)
    except Exception:
        return 48 * 1024 * 1024


def _pick_block_b(B, N, Fin, FP, vmem_limit):
    """Largest batch block that (a) keeps >= 4 grid steps (2 per TC on v7x) when
    possible and (b) fits the double-buffered block working set in VMEM."""
    def block_bytes(bb):
        a_in = bb * N * N * 2            # bf16 adjacency
        x_in = bb * N * Fin * 2          # bf16 features
        o_out = bb * N * FP * 2          # bf16 output
        w_in = Fin * FP * 2              # bf16 weight (shared)
        interm = 2 * bb * N * FP * 4     # f32 support + aty intermediates
        return 2 * (a_in + x_in + o_out) + 2 * w_in + interm
    best = 1
    for cand in (2, 4, 8, 16):
        if B % cand != 0:
            continue
        if B // cand < 4 and B // cand < B:   # keep >= 4 steps unless B itself is tiny
            continue
        if block_bytes(cand) > 0.6 * vmem_limit:
            continue
        best = cand
    return best


def gcn_forward(inputs, adj, weight, *, block_b=None):
    """inputs: (B, N, Fin) f32, adj: (B, N, N) f32 (= A + I_n), weight: (Fin, Fout) f32.

    Returns (out, lens): out is the stacked (B, N, Fout) f32 array, lens == [N]*B,
    mirroring the PyTorch forward's (outputs, lens) return.
    """
    B, N, Fin = inputs.shape
    Fout = weight.shape[1]
    FP = ((Fout + 127) // 128) * 128          # lane-dense (multiple of 128) output width

    assert N % 8 == 0, "N must be a multiple of 8 (sublane tile) for the in-kernel reshape"
    # TODO(synk): ragged / padded batches (variable node counts per example) would need
    # masking of the padded nodes in both the degree and the A^T contraction.
    # TODO(synk): for tiny N (<128) a block-diagonal packing of k examples into one
    # (kN x kN) adjacency would better fill the MXU; not done here.

    vmem_limit = _vmem_limit_bytes()
    if block_b is None:
        block_b = _pick_block_b(B, N, Fin, FP, vmem_limit)
    assert B % block_b == 0, "batch must be divisible by the batch block"

    # bf16 MXU operands (0/1 adjacency is exact in bf16); weight zero-padded to FP.
    x_bf = inputs.astype(jnp.bfloat16)
    a_bf = adj.astype(jnp.bfloat16)
    w_bf = jnp.pad(weight, ((0, 0), (0, FP - Fout))).astype(jnp.bfloat16)

    cost = pl.CostEstimate(
        flops=2 * B * N * Fin * FP + 2 * B * N * N * FP + B * N * N,
        transcendentals=B * N,
        bytes_accessed=(x_bf.size + a_bf.size + w_bf.size + B * N * FP) * 2,
    )

    out_padded = pl.pallas_call(
        gcn_kernel,
        out_shape=jax.ShapeDtypeStruct((B, N, FP), jnp.bfloat16),
        grid_spec=pltpu.PrefetchScalarGridSpec(
            num_scalar_prefetch=0,
            grid=(B // block_b,),
            in_specs=[
                pl.BlockSpec((block_b, N, Fin), lambda b: (b, 0, 0)),
                pl.BlockSpec((block_b, N, N), lambda b: (b, 0, 0)),
                pl.BlockSpec((Fin, FP), lambda b: (0, 0)),
            ],
            out_specs=pl.BlockSpec((block_b, N, FP), lambda b: (b, 0, 0)),
        ),
        compiler_params=pltpu.CompilerParams(
            dimension_semantics=("parallel",),
            vmem_limit_bytes=vmem_limit,
        ),
        cost_estimate=cost,
    )(x_bf, a_bf, w_bf)

    # Drop lane-padding columns and return f32 to the caller (small, fused slice+cast).
    out = out_padded[:, :, :Fout].astype(jnp.float32)
    lens = [N] * B
    return out, lens


def _reference(inputs, adj, weight):
    """Pure-JAX f32 reference of the PyTorch forward (per-example loop), stacked."""
    outs = []
    for i in range(inputs.shape[0]):
        A = adj[i]
        d = jnp.power(jnp.sum(A, axis=1), -0.5)
        D = jnp.diag(d)
        adj_nor = jnp.matmul(jnp.matmul(A, D).T, D)
        support = jnp.matmul(inputs[i], weight)
        outs.append(jnp.maximum(jnp.matmul(adj_nor, support), 0.0))
    return jnp.stack(outs)


if __name__ == "__main__":
    key = jax.random.PRNGKey(0)
    k_x, k_a, k_w = jax.random.split(key, 3)

    B, N, F_in, F_out = 8, 8, 16, 32

    # Node features.
    x = jax.random.normal(k_x, (B, N, F_in), dtype=jnp.float32)

    # Adjacency: random symmetric 0/1 matrix + identity (A + I_n, per the docstring),
    # so every row has degree >= 1 (no zero-degree inf/NaN path).
    raw = (jax.random.uniform(k_a, (B, N, N)) > 0.5).astype(jnp.float32)
    adj = jnp.clip(raw + jnp.transpose(raw, (0, 2, 1)), 0.0, 1.0)
    adj = jnp.clip(adj + jnp.eye(N, dtype=jnp.float32)[None], 0.0, 1.0)

    # Deterministic parameter init: weight ~ U(-stdv, stdv), stdv = 1/sqrt(out_features).
    stdv = 1.0 / math.sqrt(F_out)
    weight = jax.random.uniform(
        k_w, (F_in, F_out), minval=-stdv, maxval=stdv, dtype=jnp.float32)
    # TODO(synk): bias=False is the module default; the bias branch is not exercised here.

    out, lens = gcn_forward(x, adj, weight)
    out = jax.block_until_ready(out)

    # Sanity check against the pure-f32 reference of the PyTorch semantics
    # (tolerance accounts for bf16 matmul operands and bf16 output storage).
    ref = _reference(x, adj, weight)
    assert out.shape == (B, N, F_out)
    assert jnp.allclose(out, ref, atol=2e-2, rtol=2e-2), float(jnp.max(jnp.abs(out - ref)))
    assert lens == [N] * B

    print("KERNEL_OK")
</pallas_src>

<mosaic_0001>
module attributes {stable_mosaic.version = 11 : i64} {
  func.func @gcn_kernel(%arg0: i32, %arg1: memref<2x8x16xbf16, #tpu.memory_space<vmem>>, %arg2: memref<2x8x8xbf16, #tpu.memory_space<vmem>>, %arg3: memref<16x128xbf16, #tpu.memory_space<vmem>>, %arg4: memref<2x8x128xbf16, #tpu.memory_space<vmem>>) attributes {dimension_semantics = [#tpu.dimension_semantics<parallel>], iteration_bounds = array<i64: 4>, scalar_prefetch = 0 : i64, scratch_operands = 0 : i64, tpu.core_type = #tpu.core_type<tc>, window_params = [{transform_indices = @transform_0, window_bounds = array<i64: 2, 8, 16>}, {transform_indices = @transform_1, window_bounds = array<i64: 2, 8, 8>}, {pipeline_mode = #tpu.pipeline_mode<synchronous>, transform_indices = @transform_2, window_bounds = array<i64: 16, 128>}, {transform_indices = @transform_3, window_bounds = array<i64: 2, 8, 128>}]} {
    %c0 = arith.constant 0 : index
    %c0_0 = arith.constant 0 : index
    %c0_1 = arith.constant 0 : index
    %0 = vector.load %arg1[%c0, %c0_0, %c0_1] : memref<2x8x16xbf16, #tpu.memory_space<vmem>>, vector<2x8x16xbf16>
    %c0_2 = arith.constant 0 : index
    %c0_3 = arith.constant 0 : index
    %c0_4 = arith.constant 0 : index
    %1 = vector.load %arg2[%c0_2, %c0_3, %c0_4] : memref<2x8x8xbf16, #tpu.memory_space<vmem>>, vector<2x8x8xbf16>
    %c0_5 = arith.constant 0 : index
    %c0_6 = arith.constant 0 : index
    %2 = vector.load %arg3[%c0_5, %c0_6] : memref<16x128xbf16, #tpu.memory_space<vmem>>, vector<16x128xbf16>
    %3 = arith.extf %1 : vector<2x8x8xbf16> to vector<2x8x8xf32>
    %cst = arith.constant dense<0.000000e+00> : vector<2x8xf32>
    %4 = vector.multi_reduction <add>, %3, %cst [2] : vector<2x8x8xf32> to vector<2x8xf32>
    %5 = vector.shape_cast %4 : vector<2x8xf32> to vector<2x8x1xf32>
    %6 = math.rsqrt %5 : vector<2x8x1xf32>
    %7 = vector.shape_cast %0 : vector<2x8x16xbf16> to vector<16x16xbf16>
    %cst_7 = arith.constant dense<0.000000e+00> : vector<16x128xf32>
    %8 = tpu.matmul %7, %2, %cst_7 {dimension_numbers = #tpu.dot_dimension_numbers<[1], [0], [0], [1], [0, 0, 1, 1], [], []>} : vector<16x16xbf16>, vector<16x128xbf16>, vector<16x128xf32> -> vector<16x128xf32>
    %9 = vector.shape_cast %8 : vector<16x128xf32> to vector<2x8x128xf32>
    %10 = vector.broadcast %6 : vector<2x8x1xf32> to vector<2x8x128xf32>
    %11 = arith.mulf %10, %9 : vector<2x8x128xf32>
    %12 = arith.truncf %11 : vector<2x8x128xf32> to vector<2x8x128xbf16>
    "tpu.trace_start"() <{level = 10 : i32, message = "bji,bjf->bif"}> : () -> ()
    %cst_8 = arith.constant dense<0.000000e+00> : vector<2x8x128xf32>
    %13 = tpu.matmul %1, %12, %cst_8 {dimension_numbers = #tpu.dot_dimension_numbers<[1], [1], [2], [2], [0, 0, 0, 2, 1, 2], [0], [0]>} : vector<2x8x8xbf16>, vector<2x8x128xbf16>, vector<2x8x128xf32> -> vector<2x8x128xf32>
    "tpu.trace_stop"() : () -> ()
    %14 = vector.broadcast %6 : vector<2x8x1xf32> to vector<2x8x128xf32>
    %15 = arith.mulf %14, %13 : vector<2x8x128xf32>
    %cst_9 = arith.constant 0.000000e+00 : f32
    %16 = vector.broadcast %cst_9 : f32 to vector<2x8x128xf32>
    %17 = arith.maximumf %15, %16 : vector<2x8x128xf32>
    %18 = arith.truncf %17 : vector<2x8x128xf32> to vector<2x8x128xbf16>
    %c0_10 = arith.constant 0 : index
    %c0_11 = arith.constant 0 : index
    %c0_12 = arith.constant 0 : index
    %19 = vector.load %arg4[%c0_10, %c0_11, %c0_12] : memref<2x8x128xbf16, #tpu.memory_space<vmem>>, vector<2x8x128xbf16>
    tpu.vector_store %arg4[%c0_10, %c0_11, %c0_12], %18 {strides = array<i32>} : memref<2x8x128xbf16, #tpu.memory_space<vmem>>, vector<2x8x128xbf16>,
    return
  }
  func.func @transform_0(%arg0: i32) -> (i32, i32, i32) {
    %c0_i32 = arith.constant 0 : i32
    %c0_i32_0 = arith.constant 0 : i32
    %c0_i32_1 = arith.constant 0 : i32
    return %arg0, %c0_i32, %c0_i32_0 : i32, i32, i32
  }
  func.func @transform_1(%arg0: i32) -> (i32, i32, i32) {
    %c0_i32 = arith.constant 0 : i32
    %c0_i32_0 = arith.constant 0 : i32
    %c0_i32_1 = arith.constant 0 : i32
    return %arg0, %c0_i32, %c0_i32_0 : i32, i32, i32
  }
  func.func @transform_2(%arg0: i32) -> (i32, i32) {
    %c0_i32 = arith.constant 0 : i32
    %c0_i32_0 = arith.constant 0 : i32
    %c0_i32_1 = arith.constant 0 : i32
    return %c0_i32, %c0_i32_0 : i32, i32
  }
  func.func @transform_3(%arg0: i32) -> (i32, i32, i32) {
    %c0_i32 = arith.constant 0 : i32
    %c0_i32_0 = arith.constant 0 : i32
    %c0_i32_1 = arith.constant 0 : i32
    return %arg0, %c0_i32, %c0_i32_0 : i32, i32, i32
  }
}

</mosaic_0001>

<bundles_post_ra>
// kernel: tpu_custom_call.1
= control target key start
LH: loop header
LB: loop body
LE: loop exit
PB: predicated region body
PF: predicated region fallthrough
CT: control target
= control target key end

     0   :  { %s1158_s0 = inlined_call_operand.hbm [shape: bf16[8,8,16], index: 0, kind: input, shape index: {}]   ;;  %s1159_s1 = inlined_call_operand.hbm [shape: bf16[8,8,8], index: 1, kind: input, shape index: {}]   ;;  %s1160_s2 = inlined_call_operand.hbm [shape: bf16[16,128], index: 2, kind: input, shape index: {}]   ;;  %s1161_s3 = inlined_call_operand.hbm [shape: bf16[8,8,128], index: 3, kind: output, shape index: {}]  }
   0x1   :  { %1169 = sst [smem:[#allocation13_spill]] %s1158_s0 }
   0x2   :  { %1170 = sst [smem:[#allocation14_spill]] %s1160_s2 }
   0x3   :  { %8 = vsyncpa [#allocation3], 0 }
   0x4   :  { %10 = vsyncpa [#allocation3 + $0x1], 0 }
   0x5   :  { %11 = vsyncpa [#allocation6], 0 }
   0x6   :  { %13 = vsyncpa [#allocation6 + $0x1], 0 }
   0x7   :  { %14 = vsyncpa [#allocation4], 0 }
   0x8   :  { %16 = vsyncpa [#allocation4 + $0x1], 0  ;;  %s902_s12 = smov 0   ;;  %s904_s13 = smov 0  }
   0x9   :  { %s906_s14 = smov 0   ;;  %s908_s15 = smov 0  }
   0xa LB: > { %s923_s16 = sadd.s32 4294967295, %s870_s15   ;;  %s576_s17 = sadd.s32 4294967294, %s870_s15   ;;  %s870_s15 = sphi %s908_s15, %s1190_s15   ;;  %s866_s14 = sphi %s906_s14, %s1189_s14   ;;  %s862_s13 = sphi %s904_s13, %s1188_s13   ;;  %s858_s12 = sphi %s902_s12, %s1187_s12  }
   0xb   : > { %p42_p0 = scmp.ne.s32.totalorder %s862_s13, %s858_s12  ;;  %p1162_p1 = scmp.eq.s32.totalorder %s923_s16, 0 }
   0xc   : > { %p119_p3 = scmp.eq.s32.totalorder %s576_s17, 3  ;;  %p577_p5 = scmp.ge.s32.totalorder %s870_s15, 1 }
   0xd   : > { %p932_p4 = por %p1162_p1, %p42_p0  ;;  %p126_p7 = scmp.lt.s32.totalorder %s870_s15, 5 }
   0xe   : > { %p937_p6 = por %p119_p3, %p42_p0  ;;  %s872_s21 = smov [#allocation7]  }
   0xf   : > { %s1171_s18 = scalar_select %p932_p4, 1, 0 }
  0x10   : > { %s1172_s19 = scalar_select %p937_p6, 1, 0 }
  0x11   : > { %p942_p8 = pnand %p577_p5, %p126_p7  ;;  %s138_s22 = sshll.u32 %s872_s21, 4  ;;  %s139_s22 = int_to_ptr.vmem [resolvable:$true] %s138_s22 }
  0x12   : > { %s955_s24 = sadd.s32 1, %s870_s15   ;;  %s29_s25 = sadd.s32 1, %s866_s14 }
  0x13   : > { %s1173_s20 = scalar_select %p942_p8, 1, 0 }
  0x14   : > { %p643_p9 = pneg %p942_p8  ;;  %s26_s26 = ssub.s32 %s870_s15, %s955_s24 }
  0x15   : > { %s1175_s2 = sld [smem:[#allocation14_spill]] }
  0x16   : > { %p950_p10 = pnand %p643_p9, %p1162_p1 }
  0x18   : > { %p710_p12 = pneg %p950_p10 }
  0x1b   : > { %s708_s29 = scalar_lea.hbm %s1175_s2, 128 }
  0x1c   : > { %p709_p11 = scmp.ne.s32.totalorder %s1175_s2, %s708_s29  ;;  %p715_p3 = scmp.lt.u32.totalorder %s708_s29, %s1175_s2 }
  0x1e   : > { %p711_p13 = pnand %p710_p12, %p709_p11 }
  0x20   : > { %p712_p0 = pneg %p711_p13 }
  0x22   : > { %p717_p5 = pnand %p715_p3, %p712_p0 }
  0x24   : > { %720 = shalt.err (!%p717_p5)
}
  0x25   : > { %s721_s7 = scalar_lea.vmem %s139_s22, 128  ;;  %p729_p2 = scmp.lt.s32.totalorder %s139_s22, %s139_s22 }
  0x26   : > { %p722_p7 = scmp.ne.s32.totalorder %s139_s22, %s721_s7  ;;  %p730_p6 = scmp.lt.s32.totalorder %s721_s7, %s721_s7 }
  0x28   : > { %p724_p9 = pnand %p722_p7, %p710_p12  ;;  %p731_p4 = por %p730_p6, %p729_p2 }
  0x2a   : > { %p725_p1 = pneg %p724_p9 }
  0x2c   : > { %p732_p8 = pnand %p731_p4, %p725_p1 }
  0x2e   : > { %735 = shalt.err (!%p732_p8)
}
  0x2f   : > { %s1165_s8 = smov 64   ;;  %s1167_s9 = smov 4  }
  0x30   : > { %646 = dma.hbm_to_vmem [thread:$0]  (!%p950_p10), %s1175_s2, 128, %s139_s22, [#allocation6], %s1165_s8, %s1165_s8, %s1167_s9  }
  0x31   : > { %p27_p1 = scmp.eq.s32.totalorder %s26_s26, 0  ;;  %p36_p2 = scmp.ne.s32.totalorder %s866_s14, %s862_s13 }
  0x32   : > { %p37_p4 = scmp.eq.s32.totalorder %s870_s15, 0  ;;  %p659_p6 = scmp.lt.s32.totalorder %s870_s15, 4 }
  0x33   : > { %s984_s17 = scalar_select %p27_p1, %s866_s14, %s29_s25  }
  0x34   : > { %p38_p8 = por %p37_p4, %p36_p2  ;;  %p1176_p11 = scmp.eq.s32.totalorder %s923_s16, 3 }
  0x35   : > { %s152_s23 = sand.u32 1, %s866_s14   ;;  %s601_s27 = sshll.u32 %s870_s15, 7 }
  0x36   : > { %p988_p12 = por %p1176_p11, %p36_p2  ;;  %s994_s28 = sshll.u32 %s152_s23, 3 }
  0x37   : > { %s1178_s0 = sld [smem:[#allocation13_spill]]  ;;  %s156_s25 = scalar_lea.vmem [#allocation2], %s994_s28 }
  0x38   : > { %s163_s26 = sshll.u32 %s156_s25, 4  ;;  %p1002_p10 = pnand %p659_p6, %p38_p8  ;;  %s1006_s26 = int_to_ptr.vmem [resolvable:$true] %s163_s26 }
  0x39   : > { %s1011_s7 = scalar_lea.hbm %s1159_s1, %s601_s27  ;;  %s1013_s10 = scalar_lea.sflag [#allocation3], %s152_s23 }
  0x3a   : > { %p738_p0 = pneg %p1002_p10 }
  0x3d   : > { %s999_s22 = scalar_lea.hbm %s1178_s0, %s601_s27  ;;  %s741_s25 = scalar_lea.hbm %s1178_s0, 512 }
  0x3e   : > { %s736_s11 = scalar_lea.hbm %s999_s22, 128  ;;  %p742_p7 = scmp.lt.u32.totalorder %s999_s22, %s1178_s0 }
  0x3f   : > { %p737_p13 = scmp.ne.s32.totalorder %s999_s22, %s736_s11  ;;  %p743_p9 = scmp.lt.u32.totalorder %s741_s25, %s736_s11 }
  0x40   : > { %p745_p2 = scmp.lt.u32.totalorder %s736_s11, %s999_s22 }
  0x41   : > { %p739_p3 = pnand %p738_p0, %p737_p13  ;;  %p744_p1 = por %p743_p9, %p742_p7 }
  0x43   : > { %p740_p5 = pneg %p739_p3  ;;  %p746_p4 = por %p745_p2, %p744_p1 }
  0x45   : > { %p747_p6 = pnand %p746_p4, %p740_p5 }
  0x47   : > { %750 = shalt.err (!%p747_p6)
}
  0x48   : > { %s751_s23 = scalar_lea.vmem %s1006_s26, 128  ;;  %s875_s27 = smov [#allocation2]  }
  0x49   : > { %p752_p8 = scmp.ne.s32.totalorder %s1006_s26, %s751_s23  ;;  %s756_s5 = sshll.u32 %s875_s27, 4  ;;  %s757_s5 = int_to_ptr.vmem [resolvable:$false] %s756_s5 }
  0x4a   : > { %s758_s8 = scalar_lea.vmem %s757_s5, 256  ;;  %p759_p3 = scmp.lt.s32.totalorder %s1006_s26, %s757_s5 }
  0x4b   : > { %p754_p11 = pnand %p752_p8, %p738_p0  ;;  %p760_p7 = scmp.lt.s32.totalorder %s758_s8, %s751_s23 }
  0x4d   : > { %p755_p13 = pneg %p754_p11  ;;  %p761_p9 = por %p760_p7, %p759_p3 }
  0x4f   : > { %p762_p1 = pnand %p761_p9, %p755_p13 }
  0x51   : > { %765 = shalt.err (!%p762_p1)
}
  0x52   : > { %s1180_s9 = smov 4   ;;  %s1181_s6 = smov 64  }
  0x53   : > { %650 = dma.hbm_to_vmem [thread:$0]  (!%p1002_p10), %s999_s22, 128, %s1006_s26, %s1013_s10, %s1181_s6, %s1181_s6, %s1180_s9  }
  0x54   : > { %s177_s11 = scalar_lea.vmem [#allocation5], %s994_s28  ;;  %s173_s30 = sand.u32 1, %s870_s15  }
  0x55   : > { %s184_s29 = sshll.u32 %s177_s11, 4  ;;  %s1048_s25 = scalar_lea.sflag [#allocation6], %s173_s30  ;;  %s1046_s29 = int_to_ptr.vmem [resolvable:$true] %s184_s29 }
  0x56   : > { %s766_s23 = scalar_lea.hbm %s1011_s7, 128  ;;  %s771_s8 = scalar_lea.hbm %s1159_s1, 512 }
  0x57   : > { %p767_p5 = scmp.ne.s32.totalorder %s1011_s7, %s766_s23  ;;  %p772_p6 = scmp.lt.u32.totalorder %s1011_s7, %s1159_s1 }
  0x58   : > { %p773_p8 = scmp.lt.u32.totalorder %s771_s8, %s766_s23  ;;  %p775_p13 = scmp.lt.u32.totalorder %s766_s23, %s1011_s7 }
  0x59   : > { %p769_p2 = pnand %p767_p5, %p738_p0 }
  0x5a   : > { %p774_p11 = por %p773_p8, %p772_p6 }
  0x5b   : > { %p770_p4 = pneg %p769_p2 }
  0x5c   : > { %p776_p3 = por %p775_p13, %p774_p11 }
  0x5e   : > { %p777_p7 = pnand %p776_p3, %p770_p4 }
  0x60   : > { %780 = shalt.err (!%p777_p7)
}
  0x61   : > { %s781_s28 = scalar_lea.vmem %s1046_s29, 128  ;;  %s876_s22 = smov [#allocation5]  }
  0x62   : > { %p782_p9 = scmp.ne.s32.totalorder %s1046_s29, %s781_s28  ;;  %s786_s26 = sshll.u32 %s876_s22, 4  ;;  %s787_s26 = int_to_ptr.vmem [resolvable:$false] %s786_s26 }
  0x63   : > { %s788_s0 = scalar_lea.vmem %s787_s26, 256  ;;  %p789_p2 = scmp.lt.s32.totalorder %s1046_s29, %s787_s26 }
  0x64   : > { %p784_p1 = pnand %p782_p9, %p738_p0  ;;  %p790_p6 = scmp.lt.s32.totalorder %s788_s0, %s781_s28 }
  0x66   : > { %p785_p5 = pneg %p784_p1  ;;  %p791_p8 = por %p790_p6, %p789_p2 }
  0x68   : > { %p792_p11 = pnand %p791_p8, %p785_p5 }
  0x6a   : > { %795 = shalt.err (!%p792_p11)
}
  0x6b   : > { %653 = dma.hbm_to_vmem [thread:$0]  (!%p1002_p10), %s1011_s7, 128, %s1046_s29, %s1048_s25, %s1181_s6, %s1181_s6, %s1180_s9  }
  0x6c   : > { %p1182_p0 = scmp.ne.s32.totalorder %s1173_s20, 0 }
  0x6d   : > { %s1080_s2 = sand.u32 (!%p1182_p0), 1, %s862_s13   ;;  %p1183_p4 = scmp.ne.s32.totalorder (!%p1182_p0), %s1171_s18, 0 }
  0x6e   : > { %196 = sbr.rel (%p1182_p0) target bundleno = 585 (0x249), region = 32  ;;  %s1083_s10 = sshll.u32 (!%p1182_p0), %s1080_s2, 3 }
  0x6f   : > { %s199_s4 = scalar_lea.sflag (!%p1182_p0), [#allocation3], %s1080_s2  ;;  %s202_s11 = scalar_lea.vmem (!%p1182_p0), [#allocation2], %s1083_s10 }
  0x75   : > { %841 = dma.done.wait (%p1183_p4), %s199_s4, 128  }
  0x76   : > { %843 = vsyncadd (%p1183_p4), %s199_s4, 4294967168  ;;  %s207_s20 = sand.u32 1, %s923_s16   ;;  %s211_s9 = scalar_lea.vmem [#allocation5], %s1083_s10 }
  0x77   : > { %s208_s7 = scalar_lea.sflag [#allocation6], %s207_s20 }
  0x78   : > { %845 = dma.done.wait (%p1183_p4), %s208_s7, 128  }
  0x79   : > { %847 = vsyncadd (%p1183_p4), %s208_s7, 4294967168  ;;  %p1184_p10 = scmp.eq.s32.totalorder %s923_s16, 0 }
  0x7b   : > { %849 = dma.done.wait (%p1184_p10), [#allocation6], 128   ;;  %p1185_p13 = pmov %p1184_p10 }
  0x7c   : > { %v877_v0 = vmov 0.0   ;;  %vm878_vm0 = vmmov 0   ;;  %v702_v1 = vld [vmem:[#allocation7] sm:$0xff]   ;;  %vm275_vm1 = vcmask 130048   ;;  %v249_v3 = vld [vmem:[%s211_s9] sm:$0xf] }
  0x7d   : > { %851 = vsyncadd (%p1185_p13), [#allocation6], 4294967168  ;;  %615 = vmatprep.subr.bf16.mxu0 %v877_v0  ;;  %617 = vmatprep.mubr.msk.bf16.mxu0 %vm878_vm0, %v877_v0  ;;  %v703_v2 = vld [vmem:[%s202_s11] sm:$0xff]   ;;  %vm255_vm2 = vcmask 64512   ;;  %v250_v4 = vld [vmem:[%s211_s9 + $0x4] sm:$0xf]  ;;  %v253_v5 = vunpack.c.l.bf16 %v249_v3 }
  0x7e   : > { %621 = vmatprep.subr.bf16.mxu1 %v877_v0  ;;  %623 = vmatprep.mubr.msk.bf16.mxu1 %vm878_vm0, %v877_v0  ;;  %v254_v6 = vunpack.c.l.bf16 %v250_v4  ;;  %vm343_vm3 = vcmask 1043456   ;;  %s242_s18 = scalar_lea.vmem [#allocation8], %s1083_s10  ;;  %s603_s29 = sshll.u32 %s923_s16, 7 }
  0x7f   : > { %616 = vmatpush3.bf16.msra.mxu0 %v702_v1  ;;  %324 = vxpose.xlu1.c.b16.start.end [1/1] (short) (narrow) %v249_v3, 16  ;;  %v256_v7 = vsel %vm255_vm2, %v253_v5, 0.0  ;;  %s471_s6 = sshll.u32 %s242_s18, 4  ;;  %s1115_s23 = scalar_lea.hbm %s1161_s3, %s603_s29  ;;  %s1110_s6 = int_to_ptr.vmem [resolvable:$true] %s471_s6 }
  0x80   : > { %627 = vmatprep.subr.bf16.mxu0 %v877_v0  ;;  %257 = vadd.xlane.f32.xlu0 %v256_v7  ;;  %v259_v8 = vsel %vm255_vm2, %v254_v6, 0.0  ;;  %s458_s27 = scalar_lea.sflag [#allocation4], %s1080_s2  ;;  %s796_s5 = scalar_lea.vmem %s1110_s6, 128 }
  0x81   : > { %p797_p3 = scmp.ne.s32.totalorder %s1110_s6, %s796_s5  ;;  %s879_s16 = smov [#allocation8]  }
  0x82   : > { %618 = vmatmul.mubr.msk.bf16.vlgmr.msra.gmra.mrb[0].mxu0 %vm275_vm1, %v703_v2  ;;  %s800_s8 = sshll.u32 %s879_s16, 4  ;;  %s801_s8 = int_to_ptr.vmem [resolvable:$false] %s800_s8 }
  0x83   : > { %629 = vmatprep.mubr.msk.bf16.mxu0 %vm878_vm0, %v877_v0  ;;  %387 = vxpose.xlu1.c.b16.start.end [1/1] (short) (narrow) %v250_v4, 16  ;;  %p798_p7 = pnand %p797_p3, %p988_p12  ;;  %s802_s28 = scalar_lea.vmem %s801_s8, 256 }
  0x84   : > { %260 = vadd.xlane.f32.xlu0 %v259_v8  ;;  %p803_p1 = scmp.lt.s32.totalorder %s1110_s6, %s801_s8  ;;  %p804_p5 = scmp.lt.s32.totalorder %s802_s28, %s796_s5 }
  0x85   : > { %p799_p9 = pneg %p798_p7 }
  0x86   : > { %p805_p2 = por %p804_p5, %p803_p1 }
  0x88   : > { %p806_p6 = pnand %p805_p2, %p799_p9 }
  0xe5   : > { %v332_v17 = vpop.trf.xlu1 }
  0xe9   : > { %v395_v24 = vpop.trf.xlu1 }
 0x10d   : > { %v258_v9 = vpop.xlane.xlu0 %257 }
 0x10e   : > { %704 = vrsqrt.f32 %v258_v9 }
 0x111   : > { %v261_v10 = vpop.xlane.xlu0 %260 }
 0x112   : > { %706 = vrsqrt.f32 %v261_v10 }
 0x118   : > { %v705_v11 = vpop.eup %704 }
 0x11c   : > { %v707_v12 = vpop.eup %706 }
 0x155   : > { %v313_v13 = vpop.f32.mrb[0].mxu0 }
 0x156   : > { %v320_v14 = vmul.f32 %v705_v11, %v313_v13  ;;  %v619_v15 = vpop.f32.mrb[1].mxu0 }
 0x157   : > { %v316_v16 = vpop.f32.mrb[2].mxu0 }
 0x158   : > { %v322_v18 = vpack.c.bf16 %v320_v14, %v320_v14  ;;  %v321_v19 = vmul.f32 %v707_v12, %v316_v16  ;;  %v620_v20 = vpop.f32.mrb[3].mxu0 }
 0x15a   : > { %v323_v21 = vpack.c.bf16 %v321_v19, %v321_v19  ;;  %v345_v22 = vsel %vm343_vm3, %v322_v18, 0 }
 0x15b   : > { %622 = vmatpush3.bf16.msra.mxu1 %v345_v22 }
 0x15c   : > { %v407_v23 = vsel %vm343_vm3, %v323_v21, 0 }
 0x15d   : > { %628 = vmatpush3.bf16.msra.mxu0 %v407_v23 }
 0x15e   : > { %624 = vmatmul.mubr.msk.bf16.vlgmr.msra.gmra.mrb[0].mxu1 %vm255_vm2, %v332_v17 }
 0x160   : > { %630 = vmatmul.mubr.msk.bf16.vlgmr.msra.gmra.mrb[4].mxu0 %vm255_vm2, %v395_v24 }
 0x231   : > { %v381_v25 = vpop.f32.mrb[0].mxu1 }
 0x232   : > { %v449_v26 = vmul.f32 %v705_v11, %v381_v25  ;;  %v625_v27 = vpop.f32.mrb[1].mxu1 }
 0x233   : > { %v384_v28 = vpop.f32.mrb[2].mxu1  ;;  %v443_v29 = vpop.f32.mrb[4].mxu0 }
 0x234   : > { %v450_v30 = vmul.f32 %v707_v12, %v443_v29  ;;  %v626_v31 = vpop.f32.mrb[3].mxu1  ;;  %v631_v32 = vpop.f32.mrb[5].mxu0  ;;  %v451_v34 = vmax.f32 %v449_v26, 0.0 }
 0x235   : > { %v446_v33 = vpop.f32.mrb[6].mxu0 }
 0x236   : > { %v452_v35 = vmax.f32 %v450_v30, 0.0  ;;  %v632_v36 = vpop.f32.mrb[7].mxu0 }
 0x238   : > { %v607_v37 = vpack.c.bf16 %v452_v35, %v451_v34 }
 0x23a   : > { %608 = vst [vmem:[%s242_s18] sm:$0xff] %v607_v37  }
 0x23b   : > { %809 = shalt.err (!%p806_p6)
}
 0x23c   : > { %s810_s22 = scalar_lea.hbm %s1115_s23, 128  ;;  %s814_s10 = scalar_lea.hbm %s1161_s3, 512 }
 0x23d   : > { %p811_p8 = scmp.ne.s32.totalorder %s1115_s23, %s810_s22  ;;  %p815_p4 = scmp.lt.u32.totalorder %s1115_s23, %s1161_s3 }
 0x23e   : > { %p816_p10 = scmp.lt.u32.totalorder %s814_s10, %s810_s22  ;;  %p818_p3 = scmp.lt.u32.totalorder %s810_s22, %s1115_s23 }
 0x23f   : > { %p812_p11 = pnand %p811_p8, %p988_p12 }
 0x240   : > { %p817_p13 = por %p816_p10, %p815_p4 }
 0x241   : > { %p813_p0 = pneg %p812_p11 }
 0x242   : > { %p819_p7 = por %p818_p3, %p817_p13 }
 0x244   : > { %p820_p9 = pnand %p819_p7, %p813_p0 }
 0x246   : > { %823 = shalt.err (!%p820_p9)
}
 0x247   : > { %s880_s20 = smov 64   ;;  %s881_s7 = smov 4  }
 0x248   : > { %641 = dma.vmem_to_hbm [thread:$0]  (%p988_p12), %s1110_s6, 128, %s1115_s23, %s458_s27, %s880_s20, %s880_s20, %s881_s7  }
 0x249 PF: > { %p661_p1 = scmp.ge.s32.totalorder %s870_s15, 2  ;;  %s486_s9 = sand.u32 1, %s858_s12  }
 0x24a   : > { %p1186_p5 = scmp.ne.s32.totalorder %s1172_s19, 0  ;;  %s487_s18 = scalar_lea.sflag [#allocation4], %s486_s9 }
 0x24c   : > { %p655_p2 = pnand %p661_p1, %p1186_p5 }
 0x24e   : > { %853 = dma.done.wait (!%p655_p2), %s487_s18, 128  }
 0x24f   : > { %855 = vsyncadd (!%p655_p2), %s487_s18, 4294967168  ;;  %p19_p6 = scmp.ge.s32.totalorder %s955_s24, 6   ;;  %s1187_s12 = smov %s862_s13 }
 0x250   : > { %s1188_s13 = smov %s866_s14  ;;  %s1189_s14 = smov %s984_s17 }
 0x251   : > { %s1190_s15 = smov %s955_s24  ;;  %21 = sbr.rel (!%p19_p6) target bundleno = 10 (0xa), region = 94 }
 0x258   :  { %492 = vsyncpa [#allocation3], 1 }
 0x259   :  { %494 = vsyncpa [#allocation3 + $0x1], 1 }
 0x25a   :  { %495 = vsyncpa [#allocation6], 1 }
 0x25b   :  { %497 = vsyncpa [#allocation6 + $0x1], 1 }
 0x25c   :  { %498 = vsyncpa [#allocation4], 1 }
 0x25d   :  { %500 = vsyncpa [#allocation4 + $0x1], 1 }

</bundles_post_ra>
